<compile_context>
chip_gen: v5e
topology: v5e:2x2
jax: 0.10.0
libtpu: 0.0.40
codegen_flags: <defaults>
</compile_context>

<pallas_src>
import numpy as np
import jax
import jax.numpy as jnp
from jax.experimental import pallas as pl
from jax.experimental.pallas import tpu as pltpu

N_BINS = 32  # matches the torch-global N_BINS used by the module


def _round_up(x, m):
    return ((x + m - 1) // m) * m


def _make_onset_attn_kernel(W, ts):
    """W = 2*w_size + 1 window positions; ts = sequence tile (rows per step)."""

    def kernel(x_ref, em_ref, eh_ref, whr_ref, br_ref, webd_ref, vbd_ref,
               rep_ref, sel_ref, w1_ref, b1_ref, out_ref):
        # x_ref   : (1, ts, F)      hidden rows of this seq tile
        # em_ref  : (1, ts, F)      padded-encoder rows [si*ts, si*ts+ts)
        # eh_ref  : (1, halo, F)    padded-encoder rows [si*ts+ts, si*ts+ts+halo)
        # whr_ref : (F, W*M)        Wh^T replicated W times along lanes
        # br_ref  : (1, W*M)        attn bias replicated W times
        # webd_ref: (W*F, W*M)      block-diagonal We^T
        # vbd_ref : (W*M, W)        block-diagonal v
        # rep_ref : (W, W*F)        0/1 "repeat each attention weight F times"
        # sel_ref : (W*F, F)        0/1 "sum the W windows per feature"
        # w1_ref  : (F, OF)  b1_ref: (1, OF)
        # out_ref : (1, ts, OF+W)   packed [sigmoid(linear1) | attention]
        h = x_ref[0]                                                    # (ts, F)
        slab = jnp.concatenate([em_ref[0], eh_ref[0]], axis=0)          # (ts+halo, F)

        # All W shifted windows packed along lanes (built once, reused twice).
        win = jnp.concatenate([slab[w:w + ts, :] for w in range(W)],
                              axis=-1)                                  # (ts, W*F)

        # Energies of all W windows in one lane-dense pass:
        #   energy[:, w*M:(w+1)*M] = tanh(h @ Wh^T + win_w @ We^T + b)
        part = jnp.dot(h, whr_ref[...],
                       preferred_element_type=jnp.float32) + br_ref[...]
        energy = jnp.tanh(
            part + jnp.dot(win, webd_ref[...],
                           preferred_element_type=jnp.float32))         # (ts, W*M)

        # logits[:, w] = energy_w . v  — one MXU matmul against block-diag v.
        logits = jnp.dot(energy, vbd_ref[...],
                         preferred_element_type=jnp.float32)            # (ts, W)

        # Softmax over the window axis (exact: attention is user-visible).
        m = jnp.max(logits, axis=-1, keepdims=True)
        e = jnp.exp(logits - m)
        a = e / jnp.sum(e, axis=-1, keepdims=True)                      # (ts, W)

        # weighted[:, f] = sum_w a[:, w] * win[:, w*F + f]
        a_rep = jnp.dot(a, rep_ref[...],
                        preferred_element_type=jnp.float32)             # (ts, W*F)
        weighted = jnp.dot(a_rep * win, sel_ref[...],
                           preferred_element_type=jnp.float32)          # (ts, F)

        out = jax.nn.sigmoid(
            jnp.dot(weighted, w1_ref[...],
                    preferred_element_type=jnp.float32) + b1_ref[...])  # (ts, OF)

        # One packed (ts, OF+W) store instead of two narrow masked stores.
        out_ref[0, :, :] = jnp.concatenate([out, a], axis=-1)

    return kernel


def onset_stack_with_attn(x, enc, W_attn, b_attn, v_w, W1, b1, w_size, *, ts=2048):
    """Forward pass of Onset_Stack_with_attn.

    x, enc            : (B, S, N_BINS)
    W_attn            : (model_size, 2*N_BINS)   nn.Linear weight (out, in)
    b_attn            : (model_size,)
    v_w               : (model_size,)            v.weight.squeeze(0)
    W1                : (output_features, N_BINS), b1: (output_features,)

    Returns (sigmoid(linear1(weighted)), attention) of shapes
    (B, S, OF) and (B, S, 1, 2*w_size+1), matching the PyTorch module.
    """
    f32 = jnp.float32
    B, S, F = enc.shape
    W = 2 * w_size + 1
    M = W_attn.shape[0]
    OF = W1.shape[0]

    # halo rows read past each seq tile; ts must be a multiple of halo so the
    # halo block starts exactly where the main block ends.
    halo = max(8, _round_up(2 * w_size, 8))
    ts = max(halo, (int(ts) // halo) * halo)
    ts = min(ts, _round_up(S, halo))
    S_pad = _round_up(S, ts)
    P = S_pad + halo                      # padded encoder sequence length
    r = ts // halo                        # halo blocks per seq tile

    x = x.astype(f32)
    enc = enc.astype(f32)
    x_p = jnp.pad(x, ((0, 0), (0, S_pad - S), (0, 0)))
    enc_p = jnp.pad(enc, ((0, 0), (w_size, P - w_size - S), (0, 0)))    # (B, P, F)

    # --- tiny packed parameter matrices (block-diag / selection, MXU-side) ---
    Wh_t = W_attn[:, :F].T.astype(f32)            # (F, M)  hidden half
    We_t = W_attn[:, F:].T.astype(f32)            # (F, M)  encoder half
    eyeW = jnp.eye(W, dtype=f32)
    wh_rep = jnp.tile(Wh_t, (1, W))                               # (F, W*M)
    b_rep = jnp.tile(b_attn.astype(f32), (W,)).reshape(1, W * M)  # (1, W*M)
    we_bd = jnp.kron(eyeW, We_t)                                  # (W*F, W*M)
    v_bd = jnp.kron(eyeW, v_w.astype(f32).reshape(M, 1))          # (W*M, W)
    rep_a = jnp.kron(eyeW, jnp.ones((1, F), f32))                 # (W, W*F)
    sel = jnp.kron(jnp.ones((W, 1), f32), jnp.eye(F, dtype=f32))  # (W*F, F)
    w1_t = W1.T.astype(f32)                                       # (F, OF)
    b1_row = b1.astype(f32).reshape(1, OF)

    kernel = _make_onset_attn_kernel(W, ts)

    flops_row = 2 * (F * W * M + W * F * W * M + W * M * W + W * W * F
                     + W * F * F + F * OF)
    cost = pl.CostEstimate(
        flops=int(B * S_pad * flops_row),
        transcendentals=int(B * S_pad * (W * M + W + OF)),
        bytes_accessed=int(4 * B * S_pad * (2 * F + OF + W)))

    packed = pl.pallas_call(
        kernel,
        out_shape=jax.ShapeDtypeStruct((B, S_pad, OF + W), f32),
        grid_spec=pltpu.PrefetchScalarGridSpec(
            num_scalar_prefetch=0,
            grid=(B, S_pad // ts),
            in_specs=[
                pl.BlockSpec((1, ts, F), lambda b, si: (b, si, 0)),       # x tile
                pl.BlockSpec((1, ts, F), lambda b, si: (b, si, 0)),       # enc main
                pl.BlockSpec((1, halo, F),
                             lambda b, si: (b, (si + 1) * r, 0)),         # enc halo
                pl.BlockSpec((F, W * M), lambda b, si: (0, 0)),           # Wh replicated
                pl.BlockSpec((1, W * M), lambda b, si: (0, 0)),           # bias replicated
                pl.BlockSpec((W * F, W * M), lambda b, si: (0, 0)),       # We block-diag
                pl.BlockSpec((W * M, W), lambda b, si: (0, 0)),           # v block-diag
                pl.BlockSpec((W, W * F), lambda b, si: (0, 0)),           # repeat matrix
                pl.BlockSpec((W * F, F), lambda b, si: (0, 0)),           # window-sum sel
                pl.BlockSpec((F, OF), lambda b, si: (0, 0)),              # W1^T
                pl.BlockSpec((1, OF), lambda b, si: (0, 0)),              # b1
            ],
            out_specs=pl.BlockSpec((1, ts, OF + W), lambda b, si: (b, si, 0)),
        ),
        compiler_params=pltpu.CompilerParams(
            dimension_semantics=("parallel", "parallel"),
            vmem_limit_bytes=48 * 1024 * 1024),
        cost_estimate=cost,
    )(x_p, enc_p, enc_p, wh_rep, b_rep, we_bd, v_bd, rep_a, sel, w1_t, b1_row)

    out = packed[:, :S, :OF]
    a = packed[:, :S, OF:]
    return out, a[:, :, None, :]


def reference_forward(x, enc, W_attn, b_attn, v, W1, b1, w_size):
    """Pure-JAX mirror of the PyTorch forward (for verification)."""
    B, S, F = enc.shape
    W = 2 * w_size + 1
    padded = jnp.pad(enc, ((0, 0), (w_size, w_size), (0, 0)))
    win = jnp.stack([padded[:, i:i + S, :] for i in range(W)], axis=2)    # (B,S,W,F)
    hid = jnp.broadcast_to(x[:, :, None, :], (B, S, W, F))
    cat = jnp.concatenate([hid, win], axis=-1)                            # (B,S,W,2F)
    energy = jnp.tanh(cat @ W_attn.T + b_attn)                            # (B,S,W,M)
    logits = energy @ v                                                   # (B,S,W)
    a = jax.nn.softmax(logits, axis=-1)
    weighted = jnp.einsum('bsw,bswf->bsf', a, win)                        # (B,S,F)
    out = jax.nn.sigmoid(weighted @ W1.T + b1)                            # (B,S,OF)
    return out, a[:, :, None, :]


if __name__ == "__main__":
    def run_case(B, S, w_size, ts, key):
        F = N_BINS              # feature_size == N_BINS == hidden size of x
        model_size = 16
        output_features = 8

        kx, ke, k0, k1, k2, k3, k4 = jax.random.split(key, 7)
        x = jax.random.normal(kx, (B, S, F), dtype=jnp.float32)
        enc = jax.random.normal(ke, (B, S, F), dtype=jnp.float32)

        # deterministic synthetic parameters (nn.Linear layout: weight (out, in))
        W_attn = jax.random.normal(k0, (model_size, 2 * F), dtype=jnp.float32) * 0.1
        b_attn = jax.random.normal(k1, (model_size,), dtype=jnp.float32) * 0.1
        v_w = jax.random.normal(k2, (model_size,), dtype=jnp.float32) * 0.1
        W1 = jax.random.normal(k3, (output_features, F), dtype=jnp.float32) * 0.1
        b1 = jax.random.normal(k4, (output_features,), dtype=jnp.float32) * 0.1

        out, a = onset_stack_with_attn(x, enc, W_attn, b_attn, v_w, W1, b1,
                                       w_size, ts=ts)
        out = jax.block_until_ready(out)
        a = jax.block_until_ready(a)

        ref_out, ref_a = reference_forward(x, enc, W_attn, b_attn, v_w, W1, b1, w_size)
        np.testing.assert_allclose(np.asarray(out), np.asarray(ref_out),
                                   rtol=1e-4, atol=1e-4)
        np.testing.assert_allclose(np.asarray(a), np.asarray(ref_a),
                                   rtol=1e-4, atol=1e-4)

        assert out.shape == (B, S, output_features)
        assert a.shape == (B, S, 1, 2 * w_size + 1)

    key = jax.random.PRNGKey(0)
    ka, kb = jax.random.split(key)
    # small, module-consistent shapes (single seq tile; ts clipped down to 8)
    run_case(B=2, S=8, w_size=3, ts=2048, key=ka)
    # multi-tile sequence + seq padding (exercises the per-tile halo block path)
    run_case(B=2, S=20, w_size=3, ts=8, key=kb)
    print("KERNEL_OK")
</pallas_src>

<mosaic_0001>
module attributes {stable_mosaic.version = 11 : i64} {
  func.func @kernel(%arg0: i32, %arg1: i32, %arg2: memref<1x8x32xf32, #tpu.memory_space<vmem>>, %arg3: memref<1x8x32xf32, #tpu.memory_space<vmem>>, %arg4: memref<1x8x32xf32, #tpu.memory_space<vmem>>, %arg5: memref<32x112xf32, #tpu.memory_space<vmem>>, %arg6: memref<1x112xf32, #tpu.memory_space<vmem>>, %arg7: memref<224x112xf32, #tpu.memory_space<vmem>>, %arg8: memref<112x7xf32, #tpu.memory_space<vmem>>, %arg9: memref<7x224xf32, #tpu.memory_space<vmem>>, %arg10: memref<224x32xf32, #tpu.memory_space<vmem>>, %arg11: memref<32x8xf32, #tpu.memory_space<vmem>>, %arg12: memref<1x8xf32, #tpu.memory_space<vmem>>, %arg13: memref<1x8x15xf32, #tpu.memory_space<vmem>>) attributes {dimension_semantics = [#tpu.dimension_semantics<parallel>, #tpu.dimension_semantics<parallel>], iteration_bounds = array<i64: 2, 1>, scalar_prefetch = 0 : i64, scratch_operands = 0 : i64, tpu.core_type = #tpu.core_type<tc>, window_params = [{transform_indices = @transform_0, window_bounds = array<i64: 1, 8, 32>}, {transform_indices = @transform_1, window_bounds = array<i64: 1, 8, 32>}, {transform_indices = @transform_2, window_bounds = array<i64: 1, 8, 32>}, {pipeline_mode = #tpu.pipeline_mode<synchronous>, transform_indices = @transform_3, window_bounds = array<i64: 32, 112>}, {pipeline_mode = #tpu.pipeline_mode<synchronous>, transform_indices = @transform_4, window_bounds = array<i64: 1, 112>}, {pipeline_mode = #tpu.pipeline_mode<synchronous>, transform_indices = @transform_5, window_bounds = array<i64: 224, 112>}, {pipeline_mode = #tpu.pipeline_mode<synchronous>, transform_indices = @transform_6, window_bounds = array<i64: 112, 7>}, {pipeline_mode = #tpu.pipeline_mode<synchronous>, transform_indices = @transform_7, window_bounds = array<i64: 7, 224>}, {pipeline_mode = #tpu.pipeline_mode<synchronous>, transform_indices = @transform_8, window_bounds = array<i64: 224, 32>}, {pipeline_mode = #tpu.pipeline_mode<synchronous>, transform_indices = @transform_9, window_bounds = array<i64: 32, 8>}, {pipeline_mode = #tpu.pipeline_mode<synchronous>, transform_indices = @transform_10, window_bounds = array<i64: 1, 8>}, {transform_indices = @transform_11, window_bounds = array<i64: 1, 8, 15>}]} {
    %c0 = arith.constant 0 : index
    %c0_0 = arith.constant 0 : index
    %c0_1 = arith.constant 0 : index
    %0 = vector.load %arg2[%c0, %c0_0, %c0_1] : memref<1x8x32xf32, #tpu.memory_space<vmem>>, vector<1x8x32xf32>
    %1 = vector.shape_cast %0 : vector<1x8x32xf32> to vector<8x32xf32>
    %c0_2 = arith.constant 0 : index
    %c0_3 = arith.constant 0 : index
    %c0_4 = arith.constant 0 : index
    %2 = vector.load %arg3[%c0_2, %c0_3, %c0_4] : memref<1x8x32xf32, #tpu.memory_space<vmem>>, vector<1x8x32xf32>
    %3 = vector.shape_cast %2 : vector<1x8x32xf32> to vector<8x32xf32>
    %c0_5 = arith.constant 0 : index
    %c0_6 = arith.constant 0 : index
    %c0_7 = arith.constant 0 : index
    %4 = vector.load %arg4[%c0_5, %c0_6, %c0_7] : memref<1x8x32xf32, #tpu.memory_space<vmem>>, vector<1x8x32xf32>
    %5 = vector.shape_cast %4 : vector<1x8x32xf32> to vector<8x32xf32>
    %6 = tpu.concatenate %3, %5 in 0 : vector<8x32xf32>, vector<8x32xf32> -> vector<16x32xf32>
    %7 = vector.extract_strided_slice %6 {offsets = [0, 0], sizes = [8, 32], strides = [1, 1]} : vector<16x32xf32> to vector<8x32xf32>
    %8 = vector.extract_strided_slice %6 {offsets = [1, 0], sizes = [8, 32], strides = [1, 1]} : vector<16x32xf32> to vector<8x32xf32>
    %9 = vector.extract_strided_slice %6 {offsets = [2, 0], sizes = [8, 32], strides = [1, 1]} : vector<16x32xf32> to vector<8x32xf32>
    %10 = vector.extract_strided_slice %6 {offsets = [3, 0], sizes = [8, 32], strides = [1, 1]} : vector<16x32xf32> to vector<8x32xf32>
    %11 = vector.extract_strided_slice %6 {offsets = [4, 0], sizes = [8, 32], strides = [1, 1]} : vector<16x32xf32> to vector<8x32xf32>
    %12 = vector.extract_strided_slice %6 {offsets = [5, 0], sizes = [8, 32], strides = [1, 1]} : vector<16x32xf32> to vector<8x32xf32>
    %13 = vector.extract_strided_slice %6 {offsets = [6, 0], sizes = [8, 32], strides = [1, 1]} : vector<16x32xf32> to vector<8x32xf32>
    %14 = tpu.concatenate %7, %8, %9, %10, %11, %12, %13 in 1 : vector<8x32xf32>, vector<8x32xf32>, vector<8x32xf32>, vector<8x32xf32>, vector<8x32xf32>, vector<8x32xf32>, vector<8x32xf32> -> vector<8x224xf32>
    %c0_8 = arith.constant 0 : index
    %c0_9 = arith.constant 0 : index
    %15 = vector.load %arg5[%c0_8, %c0_9] : memref<32x112xf32, #tpu.memory_space<vmem>>, vector<32x112xf32>
    %cst = arith.constant dense<0.000000e+00> : vector<8x112xf32>
    %16 = tpu.matmul %1, %15, %cst {dimension_numbers = #tpu.dot_dimension_numbers<[1], [0], [0], [1], [0, 0, 1, 1], [], []>} : vector<8x32xf32>, vector<32x112xf32>, vector<8x112xf32> -> vector<8x112xf32>
    %c0_10 = arith.constant 0 : index
    %c0_11 = arith.constant 0 : index
    %17 = vector.load %arg6[%c0_10, %c0_11] : memref<1x112xf32, #tpu.memory_space<vmem>>, vector<1x112xf32>
    %18 = vector.broadcast %17 : vector<1x112xf32> to vector<8x112xf32>
    %19 = arith.addf %16, %18 : vector<8x112xf32>
    %c0_12 = arith.constant 0 : index
    %c0_13 = arith.constant 0 : index
    %20 = vector.load %arg7[%c0_12, %c0_13] : memref<224x112xf32, #tpu.memory_space<vmem>>, vector<224x112xf32>
    %cst_14 = arith.constant dense<0.000000e+00> : vector<8x112xf32>
    %21 = tpu.matmul %14, %20, %cst_14 {dimension_numbers = #tpu.dot_dimension_numbers<[1], [0], [0], [1], [0, 0, 1, 1], [], []>} : vector<8x224xf32>, vector<224x112xf32>, vector<8x112xf32> -> vector<8x112xf32>
    %22 = arith.addf %19, %21 : vector<8x112xf32>
    %23 = math.tanh %22 : vector<8x112xf32>
    %c0_15 = arith.constant 0 : index
    %c0_16 = arith.constant 0 : index
    %24 = vector.load %arg8[%c0_15, %c0_16] : memref<112x7xf32, #tpu.memory_space<vmem>>, vector<112x7xf32>
    %cst_17 = arith.constant dense<0.000000e+00> : vector<8x7xf32>
    %25 = tpu.matmul %23, %24, %cst_17 {dimension_numbers = #tpu.dot_dimension_numbers<[1], [0], [0], [1], [0, 0, 1, 1], [], []>} : vector<8x112xf32>, vector<112x7xf32>, vector<8x7xf32> -> vector<8x7xf32>
    %cst_18 = arith.constant dense<0xFF800000> : vector<8xf32>
    %26 = vector.multi_reduction <maximumf>, %25, %cst_18 [1] : vector<8x7xf32> to vector<8xf32>
    %27 = vector.shape_cast %26 : vector<8xf32> to vector<8x1xf32>
    %28 = vector.broadcast %27 : vector<8x1xf32> to vector<8x7xf32>
    %29 = arith.subf %25, %28 : vector<8x7xf32>
    %30 = math.exp %29 : vector<8x7xf32>
    %cst_19 = arith.constant dense<0.000000e+00> : vector<8xf32>
    %31 = vector.multi_reduction <add>, %30, %cst_19 [1] : vector<8x7xf32> to vector<8xf32>
    %32 = vector.shape_cast %31 : vector<8xf32> to vector<8x1xf32>
    %33 = vector.broadcast %32 : vector<8x1xf32> to vector<8x7xf32>
    %34 = arith.divf %30, %33 : vector<8x7xf32>
    %c0_20 = arith.constant 0 : index
    %c0_21 = arith.constant 0 : index
    %35 = vector.load %arg9[%c0_20, %c0_21] : memref<7x224xf32, #tpu.memory_space<vmem>>, vector<7x224xf32>
    %cst_22 = arith.constant dense<0.000000e+00> : vector<8x224xf32>
    %36 = tpu.matmul %34, %35, %cst_22 {dimension_numbers = #tpu.dot_dimension_numbers<[1], [0], [0], [1], [0, 0, 1, 1], [], []>} : vector<8x7xf32>, vector<7x224xf32>, vector<8x224xf32> -> vector<8x224xf32>
    %37 = arith.mulf %36, %14 : vector<8x224xf32>
    %c0_23 = arith.constant 0 : index
    %c0_24 = arith.constant 0 : index
    %38 = vector.load %arg10[%c0_23, %c0_24] : memref<224x32xf32, #tpu.memory_space<vmem>>, vector<224x32xf32>
    %cst_25 = arith.constant dense<0.000000e+00> : vector<8x32xf32>
    %39 = tpu.matmul %37, %38, %cst_25 {dimension_numbers = #tpu.dot_dimension_numbers<[1], [0], [0], [1], [0, 0, 1, 1], [], []>} : vector<8x224xf32>, vector<224x32xf32>, vector<8x32xf32> -> vector<8x32xf32>
    %c0_26 = arith.constant 0 : index
    %c0_27 = arith.constant 0 : index
    %40 = vector.load %arg11[%c0_26, %c0_27] : memref<32x8xf32, #tpu.memory_space<vmem>>, vector<32x8xf32>
    %cst_28 = arith.constant dense<0.000000e+00> : vector<8x8xf32>
    %41 = tpu.matmul %39, %40, %cst_28 {dimension_numbers = #tpu.dot_dimension_numbers<[1], [0], [0], [1], [0, 0, 1, 1], [], []>} : vector<8x32xf32>, vector<32x8xf32>, vector<8x8xf32> -> vector<8x8xf32>
    %c0_29 = arith.constant 0 : index
    %c0_30 = arith.constant 0 : index
    %42 = vector.load %arg12[%c0_29, %c0_30] : memref<1x8xf32, #tpu.memory_space<vmem>>, vector<1x8xf32>
    %43 = vector.broadcast %42 : vector<1x8xf32> to vector<8x8xf32>
    %44 = arith.addf %41, %43 : vector<8x8xf32>
    %45 = arith.negf %44 : vector<8x8xf32>
    %46 = math.exp %45 : vector<8x8xf32>
    %cst_31 = arith.constant 1.000000e+00 : f32
    %47 = vector.broadcast %cst_31 : f32 to vector<8x8xf32>
    %48 = arith.addf %47, %46 : vector<8x8xf32>
    %49 = arith.divf %47, %48 : vector<8x8xf32>
    %50 = tpu.concatenate %49, %34 in 1 : vector<8x8xf32>, vector<8x7xf32> -> vector<8x15xf32>
    %c0_32 = arith.constant 0 : index
    %c0_33 = arith.constant 0 : index
    %c0_34 = arith.constant 0 : index
    %51 = vector.load %arg13[%c0_32, %c0_33, %c0_34] : memref<1x8x15xf32, #tpu.memory_space<vmem>>, vector<1x8x15xf32>
    %52 = vector.shape_cast %51 : vector<1x8x15xf32> to vector<8x15xf32>
    %53 = vector.shape_cast %50 : vector<8x15xf32> to vector<1x8x15xf32>
    tpu.vector_store %arg13[%c0_32, %c0_33, %c0_34], %53 {strides = array<i32>} : memref<1x8x15xf32, #tpu.memory_space<vmem>>, vector<1x8x15xf32>,
    return
  }
  func.func @transform_0(%arg0: i32, %arg1: i32) -> (i32, i32, i32) {
    %c0_i32 = arith.constant 0 : i32
    %c0_i32_0 = arith.constant 0 : i32
    return %arg0, %arg1, %c0_i32 : i32, i32, i32
  }
  func.func @transform_1(%arg0: i32, %arg1: i32) -> (i32, i32, i32) {
    %c0_i32 = arith.constant 0 : i32
    %c0_i32_0 = arith.constant 0 : i32
    return %arg0, %arg1, %c0_i32 : i32, i32, i32
  }
  func.func @transform_2(%arg0: i32, %arg1: i32) -> (i32, i32, i32) {
    %c1_i32 = arith.constant 1 : i32
    %0 = arith.addi %arg1, %c1_i32 : i32
    %c1_i32_0 = arith.constant 1 : i32
    %1 = arith.muli %0, %c1_i32_0 : i32
    %c0_i32 = arith.constant 0 : i32
    %c0_i32_1 = arith.constant 0 : i32
    return %arg0, %1, %c0_i32 : i32, i32, i32
  }
  func.func @transform_3(%arg0: i32, %arg1: i32) -> (i32, i32) {
    %c0_i32 = arith.constant 0 : i32
    %c0_i32_0 = arith.constant 0 : i32
    %c0_i32_1 = arith.constant 0 : i32
    return %c0_i32, %c0_i32_0 : i32, i32
  }
  func.func @transform_4(%arg0: i32, %arg1: i32) -> (i32, i32) {
    %c0_i32 = arith.constant 0 : i32
    %c0_i32_0 = arith.constant 0 : i32
    %c0_i32_1 = arith.constant 0 : i32
    return %c0_i32, %c0_i32_0 : i32, i32
  }
  func.func @transform_5(%arg0: i32, %arg1: i32) -> (i32, i32) {
    %c0_i32 = arith.constant 0 : i32
    %c0_i32_0 = arith.constant 0 : i32
    %c0_i32_1 = arith.constant 0 : i32
    return %c0_i32, %c0_i32_0 : i32, i32
  }
  func.func @transform_6(%arg0: i32, %arg1: i32) -> (i32, i32) {
    %c0_i32 = arith.constant 0 : i32
    %c0_i32_0 = arith.constant 0 : i32
    %c0_i32_1 = arith.constant 0 : i32
    return %c0_i32, %c0_i32_0 : i32, i32
  }
  func.func @transform_7(%arg0: i32, %arg1: i32) -> (i32, i32) {
    %c0_i32 = arith.constant 0 : i32
    %c0_i32_0 = arith.constant 0 : i32
    %c0_i32_1 = arith.constant 0 : i32
    return %c0_i32, %c0_i32_0 : i32, i32
  }
  func.func @transform_8(%arg0: i32, %arg1: i32) -> (i32, i32) {
    %c0_i32 = arith.constant 0 : i32
    %c0_i32_0 = arith.constant 0 : i32
    %c0_i32_1 = arith.constant 0 : i32
    return %c0_i32, %c0_i32_0 : i32, i32
  }
  func.func @transform_9(%arg0: i32, %arg1: i32) -> (i32, i32) {
    %c0_i32 = arith.constant 0 : i32
    %c0_i32_0 = arith.constant 0 : i32
    %c0_i32_1 = arith.constant 0 : i32
    return %c0_i32, %c0_i32_0 : i32, i32
  }
  func.func @transform_10(%arg0: i32, %arg1: i32) -> (i32, i32) {
    %c0_i32 = arith.constant 0 : i32
    %c0_i32_0 = arith.constant 0 : i32
    %c0_i32_1 = arith.constant 0 : i32
    return %c0_i32, %c0_i32_0 : i32, i32
  }
  func.func @transform_11(%arg0: i32, %arg1: i32) -> (i32, i32, i32) {
    %c0_i32 = arith.constant 0 : i32
    %c0_i32_0 = arith.constant 0 : i32
    return %arg0, %arg1, %c0_i32 : i32, i32, i32
  }
}

</mosaic_0001>

<bundles_post_ra>
// kernel: tpu_custom_call.1
= control target key start
LH: loop header
LB: loop body
LE: loop exit
PB: predicated region body
PF: predicated region fallthrough
CT: control target
= control target key end

     0   :  { %16 = vsyncpa [#allocation3], 0  ;;  %s1640_s0 = inlined_call_operand.vmem [shape: f32[2,8,32], index: 0, kind: input, shape index: {}]   ;;  %s1641_s1 = inlined_call_operand.vmem [shape: f32[2,16,32], index: 1, kind: input, shape index: {}]   ;;  %s1642_s2 = inlined_call_operand.vmem [shape: f32[2,16,32], index: 2, kind: input, shape index: {}]   ;;  %s1643_s3 = inlined_call_operand.vmem [shape: f32[32,112], index: 3, kind: input, shape index: {}]   ;;  %s1644_s4 = inlined_call_operand.vmem [shape: f32[1,112], index: 4, kind: input, shape index: {}]   ;;  %s1645_s5 = inlined_call_operand.vmem [shape: f32[224,112], index: 5, kind: input, shape index: {}]   ;;  %s1646_s6 = inlined_call_operand.vmem [shape: f32[112,7], index: 6, kind: input, shape index: {}]   ;;  %s1647_s7 = inlined_call_operand.vmem [shape: f32[7,224], index: 7, kind: input, shape index: {}]   ;;  %s1648_s8 = inlined_call_operand.vmem [shape: f32[224,32], index: 8, kind: input, shape index: {}]   ;;  %s1649_s9 = inlined_call_operand.vmem [shape: f32[32,8], index: 9, kind: input, shape index: {}]   ;;  %s1650_s10 = inlined_call_operand.vmem [shape: f32[1,8], index: 10, kind: input, shape index: {}]   ;;  %s1651_s11 = inlined_call_operand.hbm [shape: f32[2,8,15], index: 11, kind: output, shape index: {}]  }
   0x1   :  { %18 = vsyncpa [#allocation3 + $0x1], 0  ;;  %s1245_s17 = smov 0   ;;  %s1247_s18 = smov 0  }
   0x2   :  { %s1249_s19 = smov 0   ;;  %s1251_s20 = smov 0  }
   0x3   :  { %s1253_s21 = smov 0   ;;  %s1255_s22 = smov 0  }
   0x4 LB: > { %1657 = sst [smem:[#allocation5_spill]] %s1159_s17  ;;  %s1001_s23 = sadd.s32 4294967295, %s1179_s22   ;;  %s1179_s22 = sphi %s1255_s22, %s24_s22   ;;  %s1175_s21 = sphi %s1253_s21, %s1670_s21   ;;  %s1171_s20 = sphi %s1251_s20, %s1669_s20   ;;  %s1167_s19 = sphi %s1249_s19, %s1668_s19   ;;  %s1163_s18 = sphi %s1247_s18, %s1672_s18   ;;  %s1159_s17 = sphi %s1245_s17, %s1671_s17  }
   0x5   : > { %1658 = sst [smem:[#allocation6_spill]] %s1167_s19  ;;  %s1002_s24 = sadd.s32 4294967294, %s1179_s22  }
   0x6   : > { %1659 = sst [smem:[#allocation7_spill]] %s1175_s21  ;;  %s36_s25 = sadd.s32 1, %s1175_s21 }
   0x7   : > { %s299_s26 = sadd.s32 1, %s1167_s19  ;;  %p38_p0 = scmp.ge.s32.totalorder %s36_s25, 2 }
   0x8   : > { %p309_p1 = scmp.ne.s32.totalorder %s1167_s19, %s1163_s18  ;;  %p310_p2 = scmp.eq.s32.totalorder %s1001_s23, 1 }
   0x9   : > { %p315_p3 = scmp.ne.s32.totalorder %s1163_s18, %s1159_s17  ;;  %s1674_s25 = smov (%p38_p0, %s36_s25), 0 }
   0xa   : > { %1660 = sst [smem:[#allocation8_spill]] %s1674_s25  ;;  %p1285_p4 = por %p310_p2, %p309_p1 }
   0xb   : > { %p316_p5 = scmp.eq.s32.totalorder %s1002_s24, 1  ;;  %s294_s28 = ssub.s32 %s1175_s21, %s1674_s25 }
   0xc   : > { %p1005_p6 = scmp.ge.s32.totalorder %s1179_s22, 1  ;;  %p297_p7 = scmp.eq.s32.totalorder %s294_s28, 0 }
   0xd   : > { %p1292_p8 = por %p316_p5, %p315_p3  ;;  %p392_p9 = scmp.lt.s32.totalorder %s1179_s22, 3 }
   0xe   : > { %s1298_s30 = scalar_select %p297_p7, %s1167_s19, %s299_s26  }
   0xf   : > { %s1662_s29 = scalar_select %p1292_p8, 1, 0 }
  0x10   : > { %1664 = sst [smem:[#allocation10_spill]] %s1298_s30  ;;  %p393_p10 = pnand %p1005_p6, %p392_p9 }
  0x11   : > { %1663 = sst [smem:[#allocation9_spill]] %s1662_s29  ;;  %p451_p11 = scmp.lt.s32.totalorder (!%p393_p10), %s1171_s20, 1 }
  0x12   : > { %396 = sbr.rel (%p393_p10) target bundleno = 1131 (0x46b), region = 64  ;;  %s1181_s14 = smov (!%p393_p10), 32  }
  0x13   : > { %s1182_s24 = smov (!%p393_p10), 96   ;;  %s448_s23 = sand.u32 (!%p393_p10), 1, %s1163_s18  }
  0x14   : > { %s1023_s26 = sshll.u32 (!%p393_p10), %s1171_s20, 3 }
  0x17   : > { %v532_v0 = vld [vmem:[%s1643_s3 + $0x18] sm:$0xff]  ;;  %v531_v1 = vld [vmem:[%s1643_s3 + $0x10] sm:$0xff]  ;;  %s1308_s16 = scalar_select %p451_p11, %s1171_s20, 1  ;;  %v530_v2 = vld [vmem:[%s1643_s3 + $0x8] sm:$0xff]  ;;  %vm507_vm0 = vcmask 1042432   ;;  %vm481_vm1 = vcmask 1046528  }
  0x18   : > { %552 = vmatpush.msra.mxu1 %v532_v0  ;;  %v587_v3 = vld [vmem:[%s1645_s5 + $0xd8] sm:$0xff]  ;;  %v586_v4 = vld [vmem:[%s1645_s5 + $0xd0] sm:$0xff]  ;;  %v529_v5 = vld [vmem:[%s1643_s3] sm:$0xff]  ;;  %vm495_vm2 = vcmask 1044480   ;;  %vm514_vm3 = vcmask 1041408   ;;  %vm488_vm4 = vcmask 1045504  }
  0x19   : > { %s1026_s25 = sshll.u32 %s1308_s16, 4  ;;  %615 = vmatpush.msra.mxu2 %v587_v3  ;;  %v585_v6 = vld [vmem:[%s1645_s5 + $0xc8] sm:$0xff]  ;;  %v575_v8 = vld [vmem:[%s1645_s5 + $0x78] sm:$0xff]  ;;  %v584_v12 = vld [vmem:[%s1645_s5 + $0xc0] sm:$0xff]  ;;  %vm521_vm5 = vcmask 261120   ;;  %vm502_vm6 = vcmask 1043456  }
  0x1a   : > { %553 = vmatpush.msra.mxu1 %v531_v1  ;;  %s465_s21 = scalar_lea.vmem %s1641_s1, %s1026_s25  ;;  %s1028_s30 = sadd.s32 8, %s1026_s25  ;;  %v574_v17 = vld [vmem:[%s1645_s5 + $0x70] sm:$0xff]  ;;  %v583_v20 = vld [vmem:[%s1645_s5 + $0xb8] sm:$0xff]  ;;  %v573_v22 = vld [vmem:[%s1645_s5 + $0x68] sm:$0xff]  ;;  %vm523_vm7 = vcmask 523264   ;;  %vm525_vm8 = vcmask 785408  }
  0x1b   : > { %s474_s17 = scalar_lea.vmem %s1642_s2, %s1028_s30  ;;  %v1332_v7 = vld [vmem:[%s465_s21] sm:$0xff]  ;;  %616 = vmatpush.msra.mxu2 %v586_v4  ;;  %v582_v27 = vld [vmem:[%s1645_s5 + $0xb0] sm:$0xff]  ;;  %v581_v29 = vld [vmem:[%s1645_s5 + $0xa8] sm:$0xff]  ;;  %s1007_s21 = sshll.u32 %s1308_s16, 3  ;;  %vm647_vm9 = vcmask 916480   ;;  %vm671_vm10 = vcmask 56320  }
  0x1c   : > { %554 = vmatpush.msra.mxu1 %v530_v2  ;;  %v1337_v9 = vld [vmem:[%s474_s17] sm:$0xff]  ;;  %v508_v10 = vrot.slane %v1332_v7, 5  ;;  %v482_v11 = vrot.slane %v1332_v7, 1  ;;  %v496_v15 = vrot.slane %v1332_v7, 3  ;;  %v515_v23 = vrot.slane %v1332_v7, 6  ;;  %v571_v30 = vld [vmem:[%s1645_s5 + $0x58] sm:$0xff]  ;;  %s889_s16 = scalar_lea.hbm %s1651_s11, %s1023_s26 }
  0x1d   : > { %v509_v13 = vrot.slane %v1337_v9, 5  ;;  %v483_v14 = vrot.slane %v1337_v9, 1  ;;  %617 = vmatpush.msra.mxu2 %v585_v6  ;;  %v497_v16 = vrot.slane %v1337_v9, 3  ;;  %v516_v24 = vrot.slane %v1337_v9, 6  ;;  %v572_v28 = vld [vmem:[%s1645_s5 + $0x60] sm:$0xff]  ;;  %v570_v33 = vld [vmem:[%s1645_s5 + $0x50] sm:$0xff] }
  0x1e   : > { %555 = vmatpush.msra.mxu1 %v529_v5  ;;  %v489_v25 = vrot.slane %v1332_v7, 2  ;;  %v490_v26 = vrot.slane %v1337_v9, 2  ;;  %v569_v34 = vld [vmem:[%s1645_s5 + $0x48] sm:$0xff]  ;;  %v568_v35 = vld [vmem:[%s1645_s5 + $0x40] sm:$0xff]  ;;  %v567_v36 = vld [vmem:[%s1645_s5 + $0x38] sm:$0xff]  ;;  %v504_v53 = vrot.slane %v1337_v9, 4 }
  0x1f   : > { %v510_v18 = vsel %vm507_vm0, %v508_v10, %v509_v13  ;;  %v484_v19 = vsel %vm481_vm1, %v482_v11, %v483_v14  ;;  %618 = vmatpush.msra.mxu2 %v584_v12  ;;  %v498_v21 = vsel %vm495_vm2, %v496_v15, %v497_v16  ;;  %v517_v31 = vsel %vm514_vm3, %v515_v23, %v516_v24  ;;  %v566_v37 = vld [vmem:[%s1645_s5 + $0x30] sm:$0xff]  ;;  %v565_v38 = vld [vmem:[%s1645_s5 + $0x28] sm:$0xff]  ;;  %v580_v39 = vld [vmem:[%s1645_s5 + $0xa0] sm:$0xff]  ;;  %s1184_s30 = smov 8   ;;  %s893_s25 = sshll.u32 %s889_s16, 4  ;;  %s894_s25 = int_to_ptr.hbm [resolvable:$true] %s893_s25 }
  0x20   : > { %591 = vmatpush.msrb.mxu1 %v575_v8  ;;  %511 = vrot.lane.b32.xlu0 %v510_v18, %s1181_s14  ;;  %v491_v32 = vsel %vm488_vm4, %v489_v25, %v490_v26  ;;  %v564_v40 = vld [vmem:[%s1645_s5 + $0x20] sm:$0xff]  ;;  %v579_v42 = vld [vmem:[%s1645_s5 + $0x98] sm:$0xff]  ;;  %v578_v44 = vld [vmem:[%s1645_s5 + $0x90] sm:$0xff]  ;;  %v503_v54 = vrot.slane %v1332_v7, 4  ;;  %vm873_vm2 = vcmask 64512   ;;  %vm875_vm4 = vcmask 121856  }
  0x21   : > { %485 = vrot.lane.b32.xlu1 %v484_v19, %s1181_s14  ;;  %499 = vrot.lane.b32.xlu2 %v498_v21, %s1182_s24  ;;  %s1183_s14 = smov 64   ;;  %v563_v43 = vld [vmem:[%s1645_s5 + $0x18] sm:$0xff]  ;;  %v562_v45 = vld [vmem:[%s1645_s5 + $0x10] sm:$0xff]  ;;  %s1006_s24 = sshll.u32 %s448_s23, 3 }
  0x22   : > { %592 = vmatpush.msrb.mxu1 %v574_v17  ;;  %619 = vmatpush.msra.mxu2 %v583_v20  ;;  %v577_v46 = vld [vmem:[%s1645_s5 + $0x88] sm:$0xff]  ;;  %v576_v48 = vld [vmem:[%s1645_s5 + $0x80] sm:$0xff]  ;;  %v505_v55 = vsel %vm502_vm6, %v503_v54, %v504_v53  ;;  %v644_v1 = vld [vmem:[%s1646_s6 + $0x58] sm:$0xff]  ;;  %s450_s13 = scalar_lea.vmem [#allocation2], %s1006_s24  ;;  %s878_s20 = scalar_lea.sflag [#allocation3], %s448_s23 }
  0x23   : > { %v561_v47 = vld [vmem:[%s1645_s5 + $0x8] sm:$0xff]  ;;  %v560_v49 = vld [vmem:[%s1645_s5] sm:$0xff]  ;;  %v643_v2 = vld [vmem:[%s1646_s6 + $0x50] sm:$0xff]  ;;  %s1605_s19 = sshll.u32 %s450_s13, 4  ;;  %s1115_s17 = sshra.s32 %s894_s25, 4  ;;  %s892_s19 = int_to_ptr.vmem [resolvable:$true] %s1605_s19  ;;  %s1116_s17 = int_to_ptr.hbm [resolvable:$true] %s1115_s17 }
  0x24   : > { %593 = vmatpush.msrb.mxu1 %v573_v22  ;;  %620 = vmatpush.msra.mxu2 %v582_v27  ;;  %v646_v50 = vld [vmem:[%s1646_s6 + $0x68] sm:$0xff]  ;;  %v645_v0 = vld [vmem:[%s1646_s6 + $0x60] sm:$0xff]  ;;  %v640_v5 = vld [vmem:[%s1646_s6 + $0x38] sm:$0xff]  ;;  %p1122_p1 = scmp.lt.s32.totalorder %s1116_s17, %s1651_s11 }
  0x25   : > { %653 = vmatpush.msra.mxu3 %v646_v50  ;;  %v642_v3 = vld [vmem:[%s1646_s6 + $0x48] sm:$0xff]  ;;  %v641_v4 = vld [vmem:[%s1646_s6 + $0x40] sm:$0xff]  ;;  %v639_v6 = vld [vmem:[%s1646_s6 + $0x30] sm:$0xff] }
  0x26   : > { %594 = vmatpush.msrb.mxu1 %v572_v28  ;;  %621 = vmatpush.msra.mxu2 %v581_v29  ;;  %v637_v8 = vld [vmem:[%s1646_s6 + $0x20] sm:$0xff]  ;;  %v636_v9 = vld [vmem:[%s1646_s6 + $0x18] sm:$0xff]  ;;  %v635_v10 = vld [vmem:[%s1646_s6 + $0x10] sm:$0xff] }
  0x27   : > { %654 = vmatpush.msra.mxu3 %v645_v0  ;;  %v634_v11 = vld [vmem:[%s1646_s6 + $0x8] sm:$0xff]  ;;  %v633_v12 = vld [vmem:[%s1646_s6] sm:$0xff]  ;;  %v775_v53 = vld [vmem:[%s1648_s8 + $0xd0] sm:$0xff] }
  0x28   : > { %595 = vmatpush.msrb.mxu1 %v571_v30  ;;  %518 = vrot.lane.b32.xlu0 %v517_v31, %s1183_s14  ;;  %v1089_v14 = vld [vmem:[%s1644_s4] ss:$0 sm:$0xff]  ;;  %v697_v29 = vld [vmem:[%s1647_s7 + $0x8] sm:$0x7f]  ;;  %v776_v31 = vld [vmem:[%s1648_s8 + $0xd8] sm:$0xff] }
  0x29   : > { %492 = vrot.lane.b32.xlu1 %v491_v32, %s1183_s14  ;;  %s457_s14 = scalar_lea.vmem %s1640_s0, %s1007_s21  ;;  %622 = vmatpush.msra.mxu2 %v580_v39  ;;  %v696_v28 = vld [vmem:[%s1647_s7] sm:$0x7f]  ;;  %v754_v54 = vld [vmem:[%s1648_s8 + $0x28] sm:$0xff]  ;;  %s1117_s21 = scalar_lea.hbm %s1116_s17, 8 }
  0x2a   : > { %596 = vmatpush.msrb.mxu1 %v570_v33  ;;  %v476_v41 = vld [vmem:[%s457_s14] sm:$0xff]  ;;  %655 = vmatpush.msra.mxu3 %v644_v1  ;;  %v750_v0 = vld [vmem:[%s1648_s8 + $0x8] sm:$0xff]  ;;  %p1118_p12 = scmp.ne.s32.totalorder %s1116_s17, %s1117_s21  ;;  %s1121_s14 = scalar_lea.hbm %s1651_s11, 16 }
  0x2b   : > { %1012 = vmatmul.msk.f32.vlgmr.msra.gmra.mxu1 %vm521_vm5, %v476_v41  ;;  %623 = vmatpush.msra.mxu2 %v579_v42  ;;  %v757_v50 = vld [vmem:[%s1648_s8 + $0x40] sm:$0xff]  ;;  %v770_v1 = vld [vmem:[%s1648_s8 + $0xa8] sm:$0xff]  ;;  %p1123_p2 = scmp.lt.s32.totalorder %s1121_s14, %s1117_s21 }
  0x2c   : > { %597 = vmatpush.msrb.mxu1 %v569_v34  ;;  %656 = vmatpush.msra.mxu3 %v643_v2  ;;  %v749_v2 = vld [vmem:[%s1648_s8] sm:$0xff]  ;;  %p1119_p13 = pnand %p1118_p12, %p1285_p4 }
  0x2d   : > { %624 = vmatpush.msra.mxu2 %v578_v44  ;;  %1015 = vmatpush.msk.msra.mxu0 %vm481_vm1, %v696_v28  ;;  %v763_v44 = vld [vmem:[%s1648_s8 + $0x70] sm:$0xff]  ;;  %p1124_p3 = por %p1123_p2, %p1122_p1 }
  0x2e   : > { %598 = vmatpush.msrb.mxu1 %v568_v35  ;;  %657 = vmatpush.msra.mxu3 %v642_v3  ;;  %v769_v3 = vld [vmem:[%s1648_s8 + $0xa0] sm:$0xff]  ;;  %p1120_p0 = pneg %p1119_p13 }
  0x2f   : > { %625 = vmatpush.msra.mxu2 %v577_v46  ;;  %1017 = vmatpush.msk.msrb.mxu0 %vm481_vm1, %v697_v29  ;;  %v761_v46 = vld [vmem:[%s1648_s8 + $0x60] sm:$0xff] }
  0x30   : > { %599 = vmatpush.msrb.mxu1 %v567_v36  ;;  %658 = vmatpush.msra.mxu3 %v641_v4  ;;  %v768_v4 = vld [vmem:[%s1648_s8 + $0x98] sm:$0xff]  ;;  %p1125_p5 = pnand %p1124_p3, %p1120_p0 }
  0x31   : > { %626 = vmatpush.msra.mxu2 %v576_v48  ;;  %v759_v48 = vld [vmem:[%s1648_s8 + $0x50] sm:$0xff] }
  0x32   : > { %600 = vmatpush.msrb.mxu1 %v566_v37  ;;  %659 = vmatpush.msra.mxu3 %v640_v5  ;;  %v767_v5 = vld [vmem:[%s1648_s8 + $0x90] sm:$0xff] }
  0x33   : > { %804 = vmatpush.msrb.mxu2 %v776_v31 }
  0x34   : > { %601 = vmatpush.msrb.mxu1 %v565_v38  ;;  %660 = vmatpush.msra.mxu3 %v639_v6  ;;  %v766_v6 = vld [vmem:[%s1648_s8 + $0x88] sm:$0xff] }
  0x35   : > { %805 = vmatpush.msrb.mxu2 %v775_v53 }
  0x36   : > { %602 = vmatpush.msrb.mxu1 %v564_v40 }
  0x38   : > { %603 = vmatpush.msrb.mxu1 %v563_v43  ;;  %v764_v43 = vld [vmem:[%s1648_s8 + $0x78] sm:$0xff] }
  0x3a   : > { %604 = vmatpush.msrb.mxu1 %v562_v45  ;;  %v762_v45 = vld [vmem:[%s1648_s8 + $0x68] sm:$0xff] }
  0x3c   : > { %605 = vmatpush.msrb.mxu1 %v561_v47  ;;  %v760_v47 = vld [vmem:[%s1648_s8 + $0x58] sm:$0xff] }
  0x3e   : > { %606 = vmatpush.msrb.mxu1 %v560_v49  ;;  %v758_v49 = vld [vmem:[%s1648_s8 + $0x48] sm:$0xff] }
  0x7b   : > { %v500_v56 = vpop.permute.xlu2 %499 }
  0x92   : > { %v512_v51 = vpop.permute.xlu0 %511 }
  0x93   : > { %v486_v52 = vpop.permute.xlu1 %485  ;;  %v527_v57 = vsel %vm521_vm5, %v505_v55, %v512_v51  ;;  %v756_v51 = vld [vmem:[%s1648_s8 + $0x38] sm:$0xff]  ;;  %v774_v55 = vld [vmem:[%s1648_s8 + $0xc8] sm:$0xff] }
  0x94   : > { %v522_v58 = vsel %vm521_vm5, %v1332_v7, %v486_v52  ;;  %v638_v7 = vld [vmem:[%s1646_s6 + $0x28] sm:$0xff]  ;;  %v755_v52 = vld [vmem:[%s1648_s8 + $0x30] sm:$0xff]  ;;  %806 = vmatpush.msrb.mxu2 %v774_v55 }
  0x95   : > { %661 = vmatpush.msra.mxu3 %v638_v7  ;;  %v765_v7 = vld [vmem:[%s1648_s8 + $0x80] sm:$0xff] }
  0x97   : > { %662 = vmatpush.msra.mxu3 %v637_v8 }
  0x99   : > { %663 = vmatpush.msra.mxu3 %v636_v9 }
  0x9a   : > { %v519_v59 = vpop.permute.xlu0 %518 }
  0x9b   : > { %v493_v60 = vpop.permute.xlu1 %492  ;;  %v1435_v62 = vsel %vm523_vm7, %v527_v57, %v519_v59  ;;  %664 = vmatpush.msra.mxu3 %v635_v10  ;;  %v773_v57 = vld [vmem:[%s1648_s8 + $0xc0] sm:$0xff]  ;;  %v772_v59 = vld [vmem:[%s1648_s8 + $0xb8] sm:$0xff] }
  0x9c   : > { %v524_v61 = vsel %vm523_vm7, %v522_v58, %v493_v60  ;;  %1013 = vmatmul.msk.f32.vlgmr.msra.gmra.mxu2 %vm525_vm8, %v1435_v62  ;;  %v752_v58 = vld [vmem:[%s1648_s8 + $0x18] sm:$0xff]  ;;  %v751_v60 = vld [vmem:[%s1648_s8 + $0x10] sm:$0xff] }
  0x9d   : > { %v1440_v63 = vsel %vm525_vm8, %v524_v61, %v500_v56  ;;  %665 = vmatpush.msra.mxu3 %v634_v11  ;;  %v753_v56 = vld [vmem:[%s1648_s8 + $0x20] sm:$0xff]  ;;  %807 = vmatpush.msrb.mxu2 %v773_v57  ;;  %v771_v61 = vld [vmem:[%s1648_s8 + $0xb0] sm:$0xff] }
  0x9e   : > { %607 = vmatmul.f32.vlgmr.msrb.gmra.mxu1 %v1440_v63 }
  0x9f   : > { %666 = vmatpush.msra.mxu3 %v633_v12  ;;  %808 = vmatpush.msrb.mxu2 %v772_v59  ;;  %v823_v12 = vld [vmem:[%s1649_s9 + $0x18] sm:$0xff] }
  0xa1   : > { %809 = vmatpush.msrb.mxu2 %v771_v61  ;;  %843 = vmatpush.msrb.mxu3 %v823_v12 }
  0xa3   : > { %810 = vmatpush.msrb.mxu2 %v770_v1 }
  0xa5   : > { %811 = vmatpush.msrb.mxu2 %v769_v3 }
  0xa7   : > { %812 = vmatpush.msrb.mxu2 %v768_v4 }
  0xa8   : > { %v557_v13 = vpop.f32.mrf.mxu1 }
  0xa9   : > { %v558_v17 = vadd.f32 %v1089_v14, %v557_v13  ;;  %813 = vmatpush.msrb.mxu2 %v767_v5  ;;  %v822_v13 = vld [vmem:[%s1649_s9 + $0x10] sm:$0xff]  ;;  %v821_v14 = vld [vmem:[%s1649_s9 + $0x8] sm:$0xff] }
  0xaa   : > { %844 = vmatpush.msrb.mxu3 %v822_v13 }
  0xab   : > { %814 = vmatpush.msrb.mxu2 %v766_v6 }
  0xac   : > { %845 = vmatpush.msrb.mxu3 %v821_v14 }
  0xad   : > { %815 = vmatpush.msrb.mxu2 %v765_v7 }
 0x11b   : > { %v608_v15 = vpop.f32.mrf.mxu1 }
 0x11f   : > { %v628_v16 = vpop.f32.mrf.mxu2 }
 0x120   : > { %v629_v18 = vadd.f32 %v628_v16, %v608_v15 }
 0x122   : > { %v631_v19 = vadd.f32 %v629_v18, %v558_v17  ;;  %v1090_v17 = vld [vmem:[%s1650_s10] ss:$0 sm:$0xff] }
 0x124   : > { %1091 = vtanh.f32 %v631_v19 }
 0x12a   : > { %v1092_v20 = vpop.eup %1091 }
 0x12b   : > { %1014 = vmatmul.msk.f32.vlgmr.msra.gmra.mxu3 %vm647_vm9, %v1092_v20 }
 0x1ae   : > { %v668_v21 = vpop.f32.mrf.mxu3 }
 0x1af   : > { %v672_v22 = vsel %vm671_vm10, %v668_v21, -inf }
 0x1b0   : > { %673 = vmax.xlane.f32.xlu2 %v672_v22 }
 0x223   : > { %v674_v23 = vpop.xlane.xlu2 %673 }
 0x224   : > { %v675_v24 = vsub.f32 %v668_v21, %v674_v23 }
 0x226   : > { %v676_v25 = vmul.f32 1.442695, %v675_v24 }
 0x228   : > { %1093 = vpow2.f32 %v676_v25 }
 0x22e   : > { %v1094_v26 = vpop.eup %1093 }
 0x22f   : > { %v678_v27 = vsel %vm671_vm10, %v1094_v26, 0.0 }
 0x230   : > { %679 = vadd.xlane.f32.xlu0 %v678_v27 }
 0x2a3   : > { %v680_v30 = vpop.xlane.xlu0 %679 }
 0x2a4   : > { %1095 = vrcp.f32 %v680_v30  ;;  %v692_v35 = vand.u32 2147483648, %v680_v30  ;;  %v690_v37 = vand.u32 2147483647, %v680_v30  ;;  %vm686_vm12 = vweird.f32 %v680_v30 }
 0x2a6   : > { %v693_v39 = vor.u32 1.1754944e-38, %v692_v35  ;;  %vm691_vm14 = vcmp.eq.f32.partialorder %v690_v37, 8.507059e+37 }
 0x2aa   : > { %v1096_v32 = vpop.eup %1095 }
 0x2ab   : > { %v682_v33 = vmul.f32 %v1096_v32, %v680_v30  ;;  %vm687_vm11 = vweird.f32 %v1096_v32 }
 0x2ac   : > { %vm688_vm13 = vmor %vm686_vm12, %vm687_vm11 }
 0x2ad   : > { %v683_v34 = vsub.f32 1.0, %v682_v33 }
 0x2af   : > { %v684_v36 = vmul.f32 %v1096_v32, %v683_v34 }
 0x2b1   : > { %v685_v38 = vadd.f32 %v1096_v32, %v684_v36 }
 0x2b3   : > { %v689_v40 = vsel %vm688_vm13, %v1096_v32, %v685_v38 }
 0x2b4   : > { %v694_v41 = vsel %vm691_vm14, %v693_v39, %v689_v40 }
 0x2b5   : > { %v695_v42 = vmul.f32 %v1094_v26, %v694_v41 }
 0x2b7   : > { %870 = vrot.lane.b32.xlu1 %v695_v42, %s1184_s30  ;;  %1016 = vmatmul.msk.f32.vlgmr.msra.gmra.mxu0 %vm671_vm10, %v695_v42 }
 0x2b8   : > { %780 = vmatpush.msra.mxu0 %v764_v43 }
 0x2ba   : > { %781 = vmatpush.msra.mxu0 %v763_v44 }
 0x2bc   : > { %782 = vmatpush.msra.mxu0 %v762_v45 }
 0x2be   : > { %783 = vmatpush.msra.mxu0 %v761_v46 }
 0x2bf   : > { %1018 = vmatmul.msk.f32.vlgmr.msrb.gmra.mxu0 %vm671_vm10, %v695_v42 }
 0x2c0   : > { %784 = vmatpush.msra.mxu0 %v760_v47 }
 0x2c2   : > { %785 = vmatpush.msra.mxu0 %v759_v48 }
 0x2c4   : > { %786 = vmatpush.msra.mxu0 %v758_v49 }
 0x2c6   : > { %787 = vmatpush.msra.mxu0 %v757_v50 }
 0x2c8   : > { %788 = vmatpush.msra.mxu0 %v756_v51 }
 0x2ca   : > { %789 = vmatpush.msra.mxu0 %v755_v52 }
 0x2cc   : > { %790 = vmatpush.msra.mxu0 %v754_v54 }
 0x2ce   : > { %791 = vmatpush.msra.mxu0 %v753_v56 }
 0x2d0   : > { %792 = vmatpush.msra.mxu0 %v752_v58 }
 0x2d2   : > { %793 = vmatpush.msra.mxu0 %v751_v60 }
 0x2d4   : > { %794 = vmatpush.msra.mxu0 %v750_v0 }
 0x2d6   : > { %795 = vmatpush.msra.mxu0 %v749_v2 }
 0x329   : > { %v871_v32 = vpop.permute.xlu1 %870 }
 0x334   : > { %v724_v8 = vpop.f32.mrf.mxu0 }
 0x335   : > { %v747_v9 = vmul.f32 %v724_v8, %v1440_v63 }
 0x337   : > { %796 = vmatmul.f32.vlgmr.msra.gmra.mxu0 %v747_v9 }
 0x33c   : > { %v744_v10 = vpop.f32.mrf.mxu0 }
 0x33d   : > { %v748_v11 = vmul.f32 %v744_v10, %v1435_v62  ;;  %v820_v62 = vld [vmem:[%s1649_s9] sm:$0xff] }
 0x33e   : > { %846 = vmatpush.msrb.mxu3 %v820_v62 }
 0x33f   : > { %1019 = vmatmul.msk.f32.vlgmr.msrb.gmra.mxu2 %vm525_vm8, %v748_v11 }
 0x3b4   : > { %v797_v63 = vpop.f32.mrf.mxu0 }
 0x3c2   : > { %v817_v15 = vpop.f32.mrf.mxu2 }
 0x3c3   : > { %v818_v16 = vadd.f32 %v817_v15, %v797_v63 }
 0x3c5   : > { %1020 = vmatmul.msk.f32.vlgmr.msrb.gmra.mxu3 %vm521_vm5, %v818_v16 }
 0x448   : > { %v848_v18 = vpop.f32.mrf.mxu3 }
 0x449   : > { %v849_v19 = vadd.f32 %v1090_v17, %v848_v18 }
 0x44b   : > { %v1021_v20 = vmul.f32 -1.442695, %v849_v19 }
 0x44d   : > { %1097 = vpow2.f32 %v1021_v20 }
 0x453   : > { %v1098_v21 = vpop.eup %1097 }
 0x454   : > { %v854_v22 = vadd.f32 1.0, %v1098_v21 }
 0x456   : > { %1099 = vrcp.f32 %v854_v22  ;;  %v866_v26 = vand.u32 2147483648, %v854_v22  ;;  %v864_v28 = vand.u32 2147483647, %v854_v22  ;;  %vm860_vm0 = vweird.f32 %v854_v22 }
 0x458   : > { %v867_v30 = vor.u32 1.1754944e-38, %v866_v26  ;;  %vm865_vm3 = vcmp.eq.f32.partialorder %v864_v28, 8.507059e+37 }
 0x45c   : > { %v1100_v23 = vpop.eup %1099 }
 0x45d   : > { %v856_v24 = vmul.f32 %v1100_v23, %v854_v22  ;;  %vm861_vm15 = vweird.f32 %v1100_v23 }
 0x45e   : > { %vm862_vm1 = vmor %vm860_vm0, %vm861_vm15 }
 0x45f   : > { %v857_v25 = vsub.f32 1.0, %v856_v24 }
 0x461   : > { %v858_v27 = vmul.f32 %v1100_v23, %v857_v25 }
 0x463   : > { %v859_v29 = vadd.f32 %v1100_v23, %v858_v27 }
 0x465   : > { %v863_v31 = vsel %vm862_vm1, %v1100_v23, %v859_v29 }
 0x466   : > { %v868_v33 = vsel %vm865_vm3, %v867_v30, %v863_v31 }
 0x467   : > { %v874_v34 = vsel %vm873_vm2, %v868_v33, %v871_v32 }
 0x468   : > { %876 = vst.msk [vmem:[%s450_s13] sm:$0xff] %vm875_vm4, %v874_v34 }
 0x469   : > { %1128 = shalt.err (!%p1125_p5)
}
 0x46a   : > { %1030 = dma.vmem_to_hbm [thread:$0]  (%p1285_p4), %s892_s19, 128, %s894_s25, %s878_s20  }
 0x46b PF: > { %s1665_s23 = sld [smem:[#allocation5_spill]]  ;;  %p1036_p6 = scmp.ge.s32.totalorder %s1179_s22, 2 }
 0x46d   : > { %p1033_p7 = pnand %p1036_p6, %p1292_p8 }
 0x46f   : > { %p1034_p9 = pneg %p1033_p7 }
 0x471   : > { %s905_s28 = sand.u32 1, %s1665_s23  }
 0x472   : > { %s906_s12 = scalar_lea.sflag [#allocation3], %s905_s28 }
 0x473   : > { %1154 = dma.done.wait (%p1034_p9), %s906_s12, 128  }
 0x474   : > { %1156 = vsyncadd (%p1034_p9), %s906_s12, 4294967168  ;;  %s24_s22 = sadd.s32 1, %s1179_s22   ;;  %s1667_s16 = sld [smem:[#allocation6_spill]] }
 0x475   : > { %p21_p10 = scmp.ge.s32.totalorder %s24_s22, 4   ;;  %s1668_s19 = sld [smem:[#allocation10_spill]] }
 0x476   : > { %s1669_s20 = sld [smem:[#allocation7_spill]]  ;;  %s1671_s17 = smov %s1163_s18 }
 0x477   : > { %s1670_s21 = sld [smem:[#allocation8_spill]]  ;;  %23 = sbr.rel (!%p21_p10) target bundleno = 4 (0x4), region = 105 }
 0x47a   : > { %s1672_s18 = smov %s1667_s16 }
 0x47c   :  { %912 = vsyncpa [#allocation3], 1 }
 0x47d   :  { %914 = vsyncpa [#allocation3 + $0x1], 1 }

</bundles_post_ra>
